<compile_context>
chip_gen: v7x
topology: tpu7x:2x2x1
jax: 0.10.0
libtpu: 0.0.40
codegen_flags: <defaults>
</compile_context>

<pallas_src>
import jax
import jax.numpy as jnp
from jax.experimental import pallas as pl
from jax.experimental.pallas import tpu as pltpu

TEXT_DIM = 768
IMG_DIM = 512
NUM_IN = 2
NUM_HID = 128           # hidden width of num_fc in the original module
NUM_CLASSES = 5

NUM_SEG_PAD = 128       # numerical segment padded 2 -> 128 (lane-aligned K)
K_PAD = TEXT_DIM + IMG_DIM + NUM_SEG_PAD   # 1408 = 11 * 128
N_PAD = 128             # classes padded 5 -> 128 (lane-dense output)


def _fused_head_kernel(x_ref, w_ref, b_ref, out_ref):
    # Single MXU matmul: (TB, 1408) bf16 @ (1408, 128) bf16 -> f32, + f32 bias.
    acc = jnp.dot(x_ref[...], w_ref[...], preferred_element_type=jnp.float32)
    out_ref[...] = (acc + b_ref[...]).astype(out_ref.dtype)


def init_params(key):
    """Deterministic synthetic init; weights stored as (in, out) (i.e. W^T)."""
    k1, k2, k3, k4 = jax.random.split(key, 4)
    w_num = jax.random.normal(k1, (NUM_IN, NUM_HID), jnp.float32) * 0.05
    b_num = jax.random.normal(k2, (NUM_HID,), jnp.float32) * 0.01
    w_cls = jax.random.normal(
        k3, (TEXT_DIM + IMG_DIM + NUM_HID, NUM_CLASSES), jnp.float32) * 0.02
    b_cls = jax.random.normal(k4, (NUM_CLASSES,), jnp.float32) * 0.01
    return (w_num, b_num, w_cls, b_cls)


def prepare_params(params):
    """Fold num_fc into the classifier and build one padded, bf16 weight tile.

    Exact because the original forward has no activation between num_fc and
    the classifier:  (x @ Wn + bn) @ Wcn = x @ (Wn @ Wcn) + bn @ Wcn.
    """
    w_num, b_num, w_cls, b_cls = params
    wc_t = w_cls[:TEXT_DIM]                              # (768, 5)
    wc_i = w_cls[TEXT_DIM:TEXT_DIM + IMG_DIM]            # (512, 5)
    wc_n = w_cls[TEXT_DIM + IMG_DIM:]                    # (128, 5)

    w_eff = w_num @ wc_n                                 # (2, 5)
    b_eff = b_num @ wc_n + b_cls                         # (5,)

    # Numerical segment padded from 2 to 128 rows with zeros.
    w_num_seg = jnp.zeros((NUM_SEG_PAD, NUM_CLASSES), jnp.float32)
    w_num_seg = w_num_seg.at[:NUM_IN].set(w_eff)

    w_fused = jnp.concatenate([wc_t, wc_i, w_num_seg], axis=0)      # (1408, 5)
    w_pad = jnp.zeros((K_PAD, N_PAD), jnp.float32)
    w_pad = w_pad.at[:, :NUM_CLASSES].set(w_fused)                  # (1408, 128)

    b_pad = jnp.zeros((1, N_PAD), jnp.float32)
    b_pad = b_pad.at[0, :NUM_CLASSES].set(b_eff)                    # (1, 128)

    return w_pad.astype(jnp.bfloat16), b_pad            # weight bf16, bias f32


def multimodal_head(text_features, image_features, numerical_data, prepared,
                    *, batch_tile=512):
    """Fused num_fc + concat + classifier.  Returns (B, NUM_CLASSES) f32."""
    w, b = prepared
    B = text_features.shape[0]

    # Build one lane-aligned activation slab (B, 1408) in bf16.
    num_pad = jnp.zeros((B, NUM_SEG_PAD - NUM_IN), jnp.bfloat16)
    x = jnp.concatenate(
        [text_features.astype(jnp.bfloat16),
         image_features.astype(jnp.bfloat16),
         numerical_data.astype(jnp.bfloat16),
         num_pad], axis=1)                               # (B, K_PAD)

    call_kwargs = {}
    if B > batch_tile and B % batch_tile == 0:
        # Large batch: 1-D grid over batch -> double-buffered activation DMA,
        # and megacore sharding on v7x.
        tb = batch_tile
        grid = (B // tb,)
        in_specs = [
            pl.BlockSpec((tb, K_PAD), lambda i: (i, 0)),
            pl.BlockSpec((K_PAD, N_PAD), lambda i: (0, 0)),
            pl.BlockSpec((1, N_PAD), lambda i: (0, 0)),
        ]
        out_spec = pl.BlockSpec((tb, N_PAD), lambda i: (i, 0))
        call_kwargs["compiler_params"] = pltpu.CompilerParams(
            dimension_semantics=("parallel",))
    else:
        # Small batch: single program, every operand is one full VMEM block.
        grid = ()
        full = lambda shape: pl.BlockSpec(shape, lambda: (0,) * len(shape))
        in_specs = [full(x.shape), full(w.shape), full(b.shape)]
        out_spec = full((B, N_PAD))

    logits_pad = pl.pallas_call(
        _fused_head_kernel,
        out_shape=jax.ShapeDtypeStruct((B, N_PAD), jnp.float32),
        grid=grid,
        in_specs=in_specs,
        out_specs=out_spec,
        **call_kwargs,
    )(x, w, b)

    return logits_pad[:, :NUM_CLASSES]


def reference(text_features, image_features, numerical_data, params):
    """Unfused f32 reference matching the original PyTorch forward()."""
    w_num, b_num, w_cls, b_cls = params
    num_feat = numerical_data @ w_num + b_num
    combined = jnp.concatenate(
        [text_features, image_features, num_feat], axis=1)
    return combined @ w_cls + b_cls


if __name__ == "__main__":
    key = jax.random.PRNGKey(0)
    kp, kt, ki, kn = jax.random.split(key, 4)

    B = 8
    params = init_params(kp)
    prepared = prepare_params(params)

    # Backbone outputs (stand-ins for BERT [CLS] and ResNet18 pooled features).
    text_features = jax.random.normal(kt, (B, TEXT_DIM), jnp.float32)
    image_features = jax.random.normal(ki, (B, IMG_DIM), jnp.float32)
    numerical_data = jax.random.normal(kn, (B, NUM_IN), jnp.float32)

    out = multimodal_head(text_features, image_features, numerical_data, prepared)
    out = jax.block_until_ready(out)

    ref = reference(text_features, image_features, numerical_data, params)
    assert out.shape == (B, NUM_CLASSES)
    # Tolerance covers the bf16 activation/weight quantization (f32 accumulate).
    assert jnp.allclose(out, ref, atol=2e-2, rtol=2e-2), "mismatch vs reference"
    print("KERNEL_OK")
</pallas_src>

<mosaic_0001>
module attributes {stable_mosaic.version = 11 : i64} {
  func.func @_fused_head_kernel(%arg0: memref<8x1408xbf16, #tpu.memory_space<vmem>>, %arg1: memref<1408x128xbf16, #tpu.memory_space<vmem>>, %arg2: memref<1x128xf32, #tpu.memory_space<vmem>>, %arg3: memref<8x128xf32, #tpu.memory_space<vmem>>) attributes {dimension_semantics = [], scalar_prefetch = 0 : i64, scratch_operands = 0 : i64, tpu.core_type = #tpu.core_type<tc>} {
    %c0 = arith.constant 0 : index
    %c0_0 = arith.constant 0 : index
    %0 = vector.load %arg0[%c0, %c0_0] : memref<8x1408xbf16, #tpu.memory_space<vmem>>, vector<8x1408xbf16>
    %c0_1 = arith.constant 0 : index
    %c0_2 = arith.constant 0 : index
    %1 = vector.load %arg1[%c0_1, %c0_2] : memref<1408x128xbf16, #tpu.memory_space<vmem>>, vector<1408x128xbf16>
    %cst = arith.constant dense<0.000000e+00> : vector<8x128xf32>
    %2 = tpu.matmul %0, %1, %cst {dimension_numbers = #tpu.dot_dimension_numbers<[1], [0], [0], [1], [0, 0, 1, 1], [], []>} : vector<8x1408xbf16>, vector<1408x128xbf16>, vector<8x128xf32> -> vector<8x128xf32>
    %c0_3 = arith.constant 0 : index
    %c0_4 = arith.constant 0 : index
    %3 = vector.load %arg2[%c0_3, %c0_4] : memref<1x128xf32, #tpu.memory_space<vmem>>, vector<1x128xf32>
    %4 = vector.broadcast %3 : vector<1x128xf32> to vector<8x128xf32>
    %5 = arith.addf %2, %4 : vector<8x128xf32>
    %c0_5 = arith.constant 0 : index
    %c0_6 = arith.constant 0 : index
    %6 = vector.load %arg3[%c0_5, %c0_6] : memref<8x128xf32, #tpu.memory_space<vmem>>, vector<8x128xf32>
    tpu.vector_store %arg3[%c0_5, %c0_6], %5 {strides = array<i32>} : memref<8x128xf32, #tpu.memory_space<vmem>>, vector<8x128xf32>,
    return
  }
}

</mosaic_0001>

<bundles_post_ra>
// kernel: tpu_custom_call.1
= control target key start
LH: loop header
LB: loop body
LE: loop exit
PB: predicated region body
PF: predicated region fallthrough
CT: control target
= control target key end

     0   :  { %8 = vsyncpa [#allocation3], 0  ;;  %s1545_s0 = inlined_call_operand.hbm [shape: bf16[8,1408], index: 0, kind: input, shape index: {}]   ;;  %s1546_s1 = inlined_call_operand.hbm [shape: bf16[1408,128], index: 1, kind: input, shape index: {}]   ;;  %s1547_s2 = inlined_call_operand.vmem [shape: f32[1,128], index: 2, kind: input, shape index: {}]   ;;  %s1548_s3 = inlined_call_operand.hbm [shape: f32[8,128], index: 3, kind: output, shape index: {}]  }
   0x1   :  { %9 = vsyncpa [#allocation6], 0 }
   0x2   :  { %10 = vsyncpa [#allocation4], 0  ;;  %s1472_s12 = smov [#allocation2]   ;;  %s1473_s14 = smov [#allocation5]  }
   0x3   :  { %s17_s13 = sshll.u32 %s1472_s12, 4  ;;  %s26_s15 = sshll.u32 %s1473_s14, 4  ;;  %s18_s13 = int_to_ptr.vmem [resolvable:$true] %s17_s13  ;;  %s1499_s15 = int_to_ptr.vmem [resolvable:$true] %s26_s15 }
   0x4   :  { %s1400_s18 = scalar_lea.hbm %s1545_s0, 704 }
   0x5   :  { %p1401_p0 = scmp.ne.s32.totalorder %s1545_s0, %s1400_s18  ;;  %p1404_p1 = scmp.lt.u32.totalorder %s1400_s18, %s1545_s0 }
   0x7   :  { %p1406_p2 = pnand %p1404_p1, %p1401_p0 }
   0x9   :  { %1409 = shalt.err (!%p1406_p2)
}
   0xa   :  { %s1410_s23 = scalar_lea.vmem %s18_s13, 704  ;;  %p1415_p4 = scmp.lt.s32.totalorder %s18_s13, %s18_s13 }
   0xb   :  { %p1411_p3 = scmp.ne.s32.totalorder %s18_s13, %s1410_s23  ;;  %p1416_p5 = scmp.lt.s32.totalorder %s1410_s23, %s1410_s23 }
   0xd   :  { %p1417_p6 = por %p1416_p5, %p1415_p4 }
   0xf   :  { %p1418_p7 = pnand %p1417_p6, %p1411_p3 }
  0x11   :  { %1421 = shalt.err (!%p1418_p7)
}
  0x12   :  { %20 = dma.hbm_to_vmem [thread:$0]  %s1545_s0, 704, %s18_s13, [#allocation3]  }
  0x13   :  { %s1422_s28 = scalar_lea.hbm %s1546_s1, 11264 }
  0x14   :  { %p1423_p8 = scmp.ne.s32.totalorder %s1546_s1, %s1422_s28  ;;  %p1426_p9 = scmp.lt.u32.totalorder %s1422_s28, %s1546_s1 }
  0x16   :  { %p1428_p10 = pnand %p1426_p9, %p1423_p8 }
  0x18   :  { %1431 = shalt.err (!%p1428_p10)
}
  0x19   :  { %s1432_s6 = scalar_lea.vmem %s1499_s15, 11264  ;;  %p1437_p12 = scmp.lt.s32.totalorder %s1499_s15, %s1499_s15 }
  0x1a   :  { %p1433_p11 = scmp.ne.s32.totalorder %s1499_s15, %s1432_s6  ;;  %p1438_p13 = scmp.lt.s32.totalorder %s1432_s6, %s1432_s6 }
  0x1c   :  { %p1439_p0 = por %p1438_p13, %p1437_p12 }
  0x1e   :  { %p1440_p1 = pnand %p1439_p0, %p1433_p11 }
  0x20   :  { %1443 = shalt.err (!%p1440_p1)
}
  0x21   :  { %s1474_s0 = smov 64   ;;  %s1475_s7 = smov 4  }
  0x22   :  { %32 = dma.hbm_to_vmem [thread:$0]  %s1546_s1, 11264, %s1499_s15, [#allocation6], %s1474_s0, %s1474_s0, %s1475_s7  }
  0x23   :  { %1466 = dma.done.wait [#allocation3], 704  }
  0x24   :  { %1467 = vsyncadd [#allocation3], 4294966592 }
  0x25   :  { %1468 = dma.done.wait [#allocation6], 11264  }
  0x26   :  { %1469 = vsyncadd [#allocation6], 4294956032  ;;  %v1301_v0 = vld [vmem:[#allocation5 + $0x40] sm:$0xff]   ;;  %v1305_v4 = vld [vmem:[#allocation5 + $0x48] sm:$0xff]   ;;  %vm1477_vm0 = vmmov 0  }
  0x27   :  { %v1302_v1 = vld [vmem:[#allocation5] sm:$0xff]   ;;  %1155 = vmatprep.subr.bf16.mxu0 %v1301_v0  ;;  %v1306_v5 = vld [vmem:[#allocation5 + $0x8] sm:$0xff]   ;;  %v1309_v8 = vld [vmem:[#allocation5 + $0x50] sm:$0xff]  }
  0x28   :  { %v1303_v2 = vld [vmem:[#allocation5 + $0xc0] sm:$0xff]   ;;  %1156 = vmatpush3.bf16.msra.mxu0 %v1302_v1  ;;  %v1307_v6 = vld [vmem:[#allocation5 + $0xc8] sm:$0xff]   ;;  %v1310_v9 = vld [vmem:[#allocation5 + $0x10] sm:$0xff]  }
  0x29   :  { %v1304_v3 = vld [vmem:[#allocation5 + $0x80] sm:$0xff]   ;;  %1177 = vmatprep.subr.bf16.mxu1 %v1303_v2  ;;  %1157 = vmatprep.subr.bf16.mxu0 %v1305_v4  ;;  %v1308_v7 = vld [vmem:[#allocation5 + $0x88] sm:$0xff]   ;;  %v1311_v10 = vld [vmem:[#allocation5 + $0xd0] sm:$0xff]  }
  0x2a   :  { %1178 = vmatpush3.bf16.msra.mxu1 %v1304_v3  ;;  %v1312_v11 = vld [vmem:[#allocation5 + $0x90] sm:$0xff]   ;;  %v1313_v12 = vld [vmem:[#allocation5 + $0x58] sm:$0xff]   ;;  %v1317_v16 = vld [vmem:[#allocation5 + $0x60] sm:$0xff]  }
  0x2b   :  { %1179 = vmatprep.subr.bf16.mxu1 %v1307_v6  ;;  %v1314_v13 = vld [vmem:[#allocation5 + $0x18] sm:$0xff]   ;;  %v1318_v17 = vld [vmem:[#allocation5 + $0x20] sm:$0xff]   ;;  %v1321_v20 = vld [vmem:[#allocation5 + $0x68] sm:$0xff]  }
  0x2c   :  { %1158 = vmatpush3.bf16.msra.mxu0 %v1306_v5  ;;  %v1315_v14 = vld [vmem:[#allocation5 + $0xd8] sm:$0xff]   ;;  %v1319_v18 = vld [vmem:[#allocation5 + $0xe0] sm:$0xff]   ;;  %v1322_v21 = vld [vmem:[#allocation5 + $0x28] sm:$0xff]  }
  0x2d   :  { %1159 = vmatprep.subr.bf16.mxu0 %v1309_v8  ;;  %v1316_v15 = vld [vmem:[#allocation5 + $0x98] sm:$0xff]   ;;  %v1320_v19 = vld [vmem:[#allocation5 + $0xa0] sm:$0xff]   ;;  %v1323_v22 = vld [vmem:[#allocation5 + $0xe8] sm:$0xff]  }
  0x2e   :  { %1180 = vmatpush3.bf16.msra.mxu1 %v1308_v7  ;;  %v1324_v23 = vld [vmem:[#allocation5 + $0xa8] sm:$0xff]   ;;  %v1325_v24 = vld [vmem:[#allocation5 + $0x70] sm:$0xff]   ;;  %v1329_v28 = vld [vmem:[#allocation5 + $0x78] sm:$0xff]  }
  0x2f   :  { %1181 = vmatprep.subr.bf16.mxu1 %v1311_v10  ;;  %v1326_v25 = vld [vmem:[#allocation5 + $0x30] sm:$0xff]   ;;  %v1330_v29 = vld [vmem:[#allocation5 + $0x38] sm:$0xff]   ;;  %v1335_v35 = vld [vmem:[#allocation5 + $0x140] sm:$0xff]  }
  0x30   :  { %1160 = vmatpush3.bf16.msra.mxu0 %v1310_v9  ;;  %v1327_v26 = vld [vmem:[#allocation5 + $0xf0] sm:$0xff]   ;;  %v1331_v30 = vld [vmem:[#allocation5 + $0xf8] sm:$0xff]   ;;  %v1338_v39 = vld [vmem:[#allocation5 + $0x100] sm:$0xff]  }
  0x31   :  { %1161 = vmatprep.subr.bf16.mxu0 %v1313_v12  ;;  %v1328_v27 = vld [vmem:[#allocation5 + $0xb0] sm:$0xff]   ;;  %v1334_v34 = vld [vmem:[#allocation5 + $0xb8] sm:$0xff]   ;;  %v1339_v40 = vld [vmem:[#allocation5 + $0x1c0] sm:$0xff]  }
  0x32   :  { %1182 = vmatpush3.bf16.msra.mxu1 %v1312_v11  ;;  %v42_v31 = vld [vmem:[#allocation2] sm:$0xff]  ;;  %v43_v36 = vld [vmem:[#allocation2 + $0x8] sm:$0xff]  ;;  %v1341_v42 = vld [vmem:[#allocation5 + $0x148] sm:$0xff]  }
  0x33   :  { %1183 = vmatprep.subr.bf16.mxu1 %v1315_v14  ;;  %v1056_v32 = vcombine.low %v42_v31, %v42_v31  ;;  %v1057_v33 = vcombine.high %v42_v31, %v42_v31  ;;  %v1058_v37 = vcombine.low %v43_v36, %v43_v36  ;;  %v1059_v38 = vcombine.high %v43_v36, %v43_v36  ;;  %v1340_v41 = vld [vmem:[#allocation5 + $0x180] sm:$0xff]   ;;  %v1342_v43 = vld [vmem:[#allocation5 + $0x108] sm:$0xff]   ;;  %v1345_v46 = vld [vmem:[#allocation5 + $0x150] sm:$0xff]  }
  0x34   :  { %1162 = vmatpush3.bf16.msra.mxu0 %v1314_v13  ;;  %v1343_v44 = vld [vmem:[#allocation5 + $0x1c8] sm:$0xff]   ;;  %v1346_v47 = vld [vmem:[#allocation5 + $0x110] sm:$0xff]   ;;  %v1349_v50 = vld [vmem:[#allocation5 + $0x158] sm:$0xff]   ;;  %v1476_v14 = vmov 0.0  }
  0x35   :  { %1163 = vmatprep.subr.bf16.mxu0 %v1317_v16  ;;  %830 = vmatprep.mubr.bf16.mxu0 %v1057_v33  ;;  %v1344_v45 = vld [vmem:[#allocation5 + $0x188] sm:$0xff]   ;;  %v1347_v48 = vld [vmem:[#allocation5 + $0x1d0] sm:$0xff]   ;;  %v1350_v51 = vld [vmem:[#allocation5 + $0x118] sm:$0xff]  }
  0x36   :  { %1184 = vmatpush3.bf16.msra.mxu1 %v1316_v15  ;;  %870 = vmatprep.mubr.bf16.mxu1 %v1059_v38  ;;  %v1348_v49 = vld [vmem:[#allocation5 + $0x190] sm:$0xff]   ;;  %v1351_v52 = vld [vmem:[#allocation5 + $0x1d8] sm:$0xff]   ;;  %v1353_v54 = vld [vmem:[#allocation5 + $0x160] sm:$0xff]  }
  0x37   :  { %1185 = vmatprep.subr.bf16.mxu1 %v1319_v18  ;;  %v1352_v53 = vld [vmem:[#allocation5 + $0x198] sm:$0xff]   ;;  %v1354_v55 = vld [vmem:[#allocation5 + $0x120] sm:$0xff]   ;;  %v1357_v58 = vld [vmem:[#allocation5 + $0x168] sm:$0xff]  }
  0x38   :  { %1164 = vmatpush3.bf16.msra.mxu0 %v1318_v17  ;;  %v1355_v56 = vld [vmem:[#allocation5 + $0x1e0] sm:$0xff]   ;;  %v1358_v59 = vld [vmem:[#allocation5 + $0x128] sm:$0xff]   ;;  %v1361_v62 = vld [vmem:[#allocation5 + $0x170] sm:$0xff]  }
  0x39   :  { %1165 = vmatprep.subr.bf16.mxu0 %v1321_v20  ;;  %v1356_v57 = vld [vmem:[#allocation5 + $0x1a0] sm:$0xff]   ;;  %v1359_v60 = vld [vmem:[#allocation5 + $0x1e8] sm:$0xff]   ;;  %v1362_v63 = vld [vmem:[#allocation5 + $0x130] sm:$0xff]  }
  0x3a   :  { %1186 = vmatpush3.bf16.msra.mxu1 %v1320_v19  ;;  %v1360_v61 = vld [vmem:[#allocation5 + $0x1a8] sm:$0xff]   ;;  %v1363_v0 = vld [vmem:[#allocation5 + $0x1f0] sm:$0xff]   ;;  %v1365_v2 = vld [vmem:[#allocation5 + $0x178] sm:$0xff]  }
  0x3b   :  { %1187 = vmatprep.subr.bf16.mxu1 %v1323_v22  ;;  %v1364_v1 = vld [vmem:[#allocation5 + $0x1b0] sm:$0xff]   ;;  %v1366_v3 = vld [vmem:[#allocation5 + $0x138] sm:$0xff]   ;;  %v44_v5 = vld [vmem:[#allocation2 + $0x10] sm:$0xff] }
  0x3c   :  { %1166 = vmatpush3.bf16.msra.mxu0 %v1322_v21  ;;  %v1367_v4 = vld [vmem:[#allocation5 + $0x1f8] sm:$0xff]   ;;  %v1060_v6 = vcombine.low %v44_v5, %v44_v5  ;;  %v1061_v7 = vcombine.high %v44_v5, %v44_v5  ;;  %v1371_v9 = vld [vmem:[#allocation5 + $0x240] sm:$0xff]   ;;  %v45_v10 = vld [vmem:[#allocation2 + $0x18] sm:$0xff] }
  0x3d   :  { %1167 = vmatprep.subr.bf16.mxu0 %v1325_v24  ;;  %v1370_v8 = vld [vmem:[#allocation5 + $0x1b8] sm:$0xff]   ;;  %v1062_v11 = vcombine.low %v45_v10, %v45_v10  ;;  %v1063_v12 = vcombine.high %v45_v10, %v45_v10  ;;  %v1374_v13 = vld [vmem:[#allocation5 + $0x200] sm:$0xff]   ;;  %v1376_v16 = vld [vmem:[#allocation5 + $0x248] sm:$0xff]  }
  0x3e   :  { %1188 = vmatpush3.bf16.msra.mxu1 %v1324_v23  ;;  %v1375_v15 = vld [vmem:[#allocation5 + $0x280] sm:$0xff]   ;;  %v1377_v17 = vld [vmem:[#allocation5 + $0x208] sm:$0xff]   ;;  %v1379_v19 = vld [vmem:[#allocation5 + $0x250] sm:$0xff]  }
  0x3f   :  { %1189 = vmatprep.subr.bf16.mxu1 %v1327_v26  ;;  %v1378_v18 = vld [vmem:[#allocation5 + $0x288] sm:$0xff]   ;;  %v1380_v20 = vld [vmem:[#allocation5 + $0x210] sm:$0xff]   ;;  %v1382_v22 = vld [vmem:[#allocation5 + $0x258] sm:$0xff]  }
  0x40   :  { %1168 = vmatpush3.bf16.msra.mxu0 %v1326_v25  ;;  %v1381_v21 = vld [vmem:[#allocation5 + $0x290] sm:$0xff]   ;;  %v1383_v23 = vld [vmem:[#allocation5 + $0x218] sm:$0xff]   ;;  %v1385_v24 = vld [vmem:[#allocation5 + $0x260] sm:$0xff]  }
  0x41   :  { %1169 = vmatprep.subr.bf16.mxu0 %v1329_v28  ;;  %v1384_v25 = vld [vmem:[#allocation5 + $0x298] sm:$0xff]   ;;  %v1386_v26 = vld [vmem:[#allocation5 + $0x220] sm:$0xff]   ;;  %v1390_v31 = vld [vmem:[#allocation5 + $0x2a8] sm:$0xff]  }
  0x42   :  { %1190 = vmatpush3.bf16.msra.mxu1 %v1328_v27  ;;  %v1388_v27 = vld [vmem:[#allocation5 + $0x268] sm:$0xff]   ;;  %v1387_v28 = vld [vmem:[#allocation5 + $0x2a0] sm:$0xff]   ;;  %v1392_v33 = vld [vmem:[#allocation5 + $0x230] sm:$0xff]  }
  0x43   :  { %1191 = vmatprep.subr.bf16.mxu1 %v1331_v30  ;;  %v1391_v30 = vld [vmem:[#allocation5 + $0x270] sm:$0xff]   ;;  %v1398_v38 = vld [vmem:[#allocation5 + $0x2b8] sm:$0xff]  }
  0x44   :  { %1170 = vmatpush3.bf16.msra.mxu0 %v1330_v29  ;;  %v1389_v29 = vld [vmem:[#allocation5 + $0x228] sm:$0xff]   ;;  %v1393_v36 = vld [vmem:[#allocation5 + $0x2b0] sm:$0xff]  }
  0x45   :  { %1199 = vmatprep.subr.bf16.mxu0 %v1335_v35  ;;  %v1394_v35 = vld [vmem:[#allocation5 + $0x278] sm:$0xff]  }
  0x46   :  { %1192 = vmatpush3.bf16.msra.mxu1 %v1334_v34 }
  0x47   :  { %831 = vmatmul.mubr.bf16.vlgmr.msra.gmra.mrb[0].mxu0 %v1056_v32  ;;  %1221 = vmatprep.subr.bf16.mxu1 %v1339_v40  ;;  %v46_v32 = vld [vmem:[#allocation2 + $0x20] sm:$0xff]  ;;  %v1399_v40 = vld [vmem:[#allocation2 + $0x28] ss:$0 sps:$4 sm:$0xff]  }
  0x48   :  { %1200 = vmatpush3.bf16.msra.mxu0 %v1338_v39  ;;  %910 = vmatprep.mubr.bf16.mxu0 %v1061_v7  ;;  %v1065_v34 = vcombine.high %v46_v32, %v46_v32  ;;  %v1064_v39 = vcombine.low %v46_v32, %v46_v32 }
  0x49   :  { %871 = vmatmul.mubr.bf16.vlgmr.msra.gmra.mrb[0].mxu1 %v1058_v37  ;;  %1201 = vmatprep.subr.bf16.mxu0 %v1341_v42  ;;  %v1395_v37 = vld [vmem:[#allocation5 + $0x238] sm:$0xff]   ;;  %v1055_v42 = vld [vmem:[%s1547_s2] ss:$0 sm:$0xff]  ;;  %s1478_s2 = smov [#allocation7]  }
  0x4a   :  { %1222 = vmatpush3.bf16.msra.mxu1 %v1340_v41  ;;  %950 = vmatprep.mubr.bf16.mxu1 %v1063_v12  ;;  %s1045_s11 = sshll.u32 %s1478_s2, 4  ;;  %s1046_s11 = int_to_ptr.vmem [resolvable:$true] %s1045_s11 }
  0x4b   :  { %1223 = vmatprep.subr.bf16.mxu1 %v1343_v44  ;;  %s1444_s12 = scalar_lea.vmem %s1046_s11, 128  ;;  %p1449_p3 = scmp.lt.s32.totalorder %s1046_s11, %s1046_s11 }
  0x4c   :  { %1202 = vmatpush3.bf16.msra.mxu0 %v1342_v43  ;;  %p1445_p2 = scmp.ne.s32.totalorder %s1046_s11, %s1444_s12  ;;  %p1450_p4 = scmp.lt.s32.totalorder %s1444_s12, %s1444_s12 }
  0x4d   :  { %1203 = vmatprep.subr.bf16.mxu0 %v1345_v46 }
  0x4e   :  { %1224 = vmatpush3.bf16.msra.mxu1 %v1344_v45  ;;  %p1451_p5 = por %p1450_p4, %p1449_p3 }
  0x4f   :  { %1225 = vmatprep.subr.bf16.mxu1 %v1347_v48 }
  0x50   :  { %1204 = vmatpush3.bf16.msra.mxu0 %v1346_v47  ;;  %p1452_p6 = pnand %p1451_p5, %p1445_p2 }
  0x51   :  { %1205 = vmatprep.subr.bf16.mxu0 %v1349_v50 }
  0x52   :  { %1226 = vmatpush3.bf16.msra.mxu1 %v1348_v49 }
  0x53   :  { %1227 = vmatprep.subr.bf16.mxu1 %v1351_v52 }
  0x54   :  { %1206 = vmatpush3.bf16.msra.mxu0 %v1350_v51 }
  0x55   :  { %1207 = vmatprep.subr.bf16.mxu0 %v1353_v54 }
  0x56   :  { %1228 = vmatpush3.bf16.msra.mxu1 %v1352_v53 }
  0x57   :  { %1229 = vmatprep.subr.bf16.mxu1 %v1355_v56 }
  0x58   :  { %1208 = vmatpush3.bf16.msra.mxu0 %v1354_v55 }
  0x59   :  { %1209 = vmatprep.subr.bf16.mxu0 %v1357_v58 }
  0x5a   :  { %1230 = vmatpush3.bf16.msra.mxu1 %v1356_v57 }
  0x5b   :  { %1231 = vmatprep.subr.bf16.mxu1 %v1359_v60 }
  0x5c   :  { %1210 = vmatpush3.bf16.msra.mxu0 %v1358_v59 }
  0x5d   :  { %1211 = vmatprep.subr.bf16.mxu0 %v1361_v62 }
  0x5e   :  { %1232 = vmatpush3.bf16.msra.mxu1 %v1360_v61 }
  0x5f   :  { %1233 = vmatprep.subr.bf16.mxu1 %v1363_v0 }
  0x60   :  { %1212 = vmatpush3.bf16.msra.mxu0 %v1362_v63 }
  0x61   :  { %1213 = vmatprep.subr.bf16.mxu0 %v1365_v2 }
  0x62   :  { %1234 = vmatpush3.bf16.msra.mxu1 %v1364_v1 }
  0x63   :  { %1235 = vmatprep.subr.bf16.mxu1 %v1367_v4 }
  0x64   :  { %1214 = vmatpush3.bf16.msra.mxu0 %v1366_v3 }
  0x65   :  { %1243 = vmatprep.subr.bf16.mxu0 %v1371_v9 }
  0x66   :  { %1236 = vmatpush3.bf16.msra.mxu1 %v1370_v8 }
  0x67   :  { %911 = vmatmul.mubr.bf16.vlgmr.msra.gmra.mrb[4].mxu0 %v1060_v6  ;;  %1274 = vmatprep.subr.bf16.mxu1 %v1476_v14 }
  0x68   :  { %1244 = vmatpush3.bf16.msra.mxu0 %v1374_v13  ;;  %990 = vmatprep.mubr.bf16.mxu0 %v1065_v34 }
  0x69   :  { %951 = vmatmul.mubr.bf16.vlgmr.msra.gmra.mrb[4].mxu1 %v1062_v11  ;;  %1245 = vmatprep.subr.bf16.mxu0 %v1376_v16 }
  0x6a   :  { %1275 = vmatpush3.bf16.msra.mxu1 %v1375_v15  ;;  %1290 = vmatprep.mubr.msk.bf16.mxu1 %vm1477_vm0, %v1476_v14 }
  0x6b   :  { %1276 = vmatprep.subr.bf16.mxu1 %v1476_v14 }
  0x6c   :  { %1246 = vmatpush3.bf16.msra.mxu0 %v1377_v17 }
  0x6d   :  { %1247 = vmatprep.subr.bf16.mxu0 %v1379_v19 }
  0x6e   :  { %1277 = vmatpush3.bf16.msra.mxu1 %v1378_v18 }
  0x6f   :  { %1278 = vmatprep.subr.bf16.mxu1 %v1476_v14 }
  0x70   :  { %1248 = vmatpush3.bf16.msra.mxu0 %v1380_v20 }
  0x71   :  { %1249 = vmatprep.subr.bf16.mxu0 %v1382_v22 }
  0x72   :  { %1279 = vmatpush3.bf16.msra.mxu1 %v1381_v21 }
  0x73   :  { %1280 = vmatprep.subr.bf16.mxu1 %v1476_v14 }
  0x74   :  { %1250 = vmatpush3.bf16.msra.mxu0 %v1383_v23 }
  0x75   :  { %1251 = vmatprep.subr.bf16.mxu0 %v1385_v24 }
  0x76   :  { %1281 = vmatpush3.bf16.msra.mxu1 %v1384_v25 }
  0x77   :  { %1282 = vmatprep.subr.bf16.mxu1 %v1476_v14 }
  0x78   :  { %1252 = vmatpush3.bf16.msra.mxu0 %v1386_v26 }
  0x79   :  { %1253 = vmatprep.subr.bf16.mxu0 %v1388_v27 }
  0x7a   :  { %1283 = vmatpush3.bf16.msra.mxu1 %v1387_v28 }
  0x7b   :  { %1284 = vmatprep.subr.bf16.mxu1 %v1476_v14 }
  0x7c   :  { %1254 = vmatpush3.bf16.msra.mxu0 %v1389_v29 }
  0x7d   :  { %1255 = vmatprep.subr.bf16.mxu0 %v1391_v30 }
  0x7e   :  { %1285 = vmatpush3.bf16.msra.mxu1 %v1390_v31 }
  0x7f   :  { %1286 = vmatprep.subr.bf16.mxu1 %v1476_v14 }
  0x80   :  { %1256 = vmatpush3.bf16.msra.mxu0 %v1392_v33 }
  0x81   :  { %1257 = vmatprep.subr.bf16.mxu0 %v1394_v35 }
  0x82   :  { %1287 = vmatpush3.bf16.msra.mxu1 %v1393_v36 }
  0x83   :  { %1288 = vmatprep.subr.bf16.mxu1 %v1476_v14 }
  0x84   :  { %1258 = vmatpush3.bf16.msra.mxu0 %v1395_v37 }
  0x86   :  { %1289 = vmatpush3.bf16.msra.mxu1 %v1398_v38 }
  0x87   :  { %991 = vmatmul.mubr.bf16.vlgmr.msra.gmra.mrb[8].mxu0 %v1064_v39 }
  0x89   :  { %1291 = vmatmul.mubr.bf16.vlgmr.msra.gmra.mrb[8].mxu1 %v1399_v40 }
 0x11a   :  { %v1171_v41 = vpop.f32.mrb[0].mxu0 }
 0x11b   :  { %v1172_v43 = vpop.f32.mrb[1].mxu0 }
 0x11c   :  { %v1173_v44 = vadd.f32 %v1172_v43, %v1171_v41  ;;  %v1174_v45 = vpop.f32.mrb[2].mxu0  ;;  %v1193_v46 = vpop.f32.mrb[0].mxu1 }
 0x11d   :  { %v1175_v47 = vpop.f32.mrb[3].mxu0  ;;  %v1194_v48 = vpop.f32.mrb[1].mxu1 }
 0x11e   :  { %v833_v49 = vadd.f32 %v1173_v44, %v1055_v42  ;;  %v1195_v50 = vadd.f32 %v1194_v48, %v1193_v46  ;;  %v1196_v51 = vpop.f32.mrb[2].mxu1 }
 0x11f   :  { %v1197_v52 = vpop.f32.mrb[3].mxu1 }
 0x120   :  { %v873_v53 = vadd.f32 %v1195_v50, %v833_v49 }
 0x13a   :  { %v1215_v54 = vpop.f32.mrb[4].mxu0 }
 0x13b   :  { %v1216_v55 = vpop.f32.mrb[5].mxu0 }
 0x13c   :  { %v1217_v56 = vadd.f32 %v1216_v55, %v1215_v54  ;;  %v1218_v57 = vpop.f32.mrb[6].mxu0  ;;  %v1237_v58 = vpop.f32.mrb[4].mxu1 }
 0x13d   :  { %v1219_v59 = vpop.f32.mrb[7].mxu0  ;;  %v1238_v61 = vpop.f32.mrb[5].mxu1 }
 0x13e   :  { %v913_v60 = vadd.f32 %v1217_v56, %v873_v53  ;;  %v1239_v62 = vadd.f32 %v1238_v61, %v1237_v58  ;;  %v1240_v63 = vpop.f32.mrb[6].mxu1 }
 0x13f   :  { %v1241_v0 = vpop.f32.mrb[7].mxu1 }
 0x140   :  { %v953_v1 = vadd.f32 %v1239_v62, %v913_v60 }
 0x15a   :  { %v1259_v2 = vpop.f32.mrb[8].mxu0 }
 0x15b   :  { %v1260_v3 = vpop.f32.mrb[9].mxu0 }
 0x15c   :  { %v1261_v4 = vadd.f32 %v1260_v3, %v1259_v2  ;;  %v1262_v5 = vpop.f32.mrb[10].mxu0  ;;  %v1032_v6 = vpop.f32.mrb[8].mxu1 }
 0x15d   :  { %v1263_v7 = vpop.f32.mrb[11].mxu0  ;;  %v1292_v8 = vpop.f32.mrb[9].mxu1 }
 0x15e   :  { %v993_v9 = vadd.f32 %v1261_v4, %v953_v1  ;;  %v1035_v10 = vpop.f32.mrb[10].mxu1 }
 0x15f   :  { %v1293_v11 = vpop.f32.mrb[11].mxu1 }
 0x160   :  { %v1033_v12 = vadd.f32 %v1032_v6, %v993_v9 }
 0x162   :  { %1038 = vst [vmem:[#allocation7] sm:$0xff] %v1033_v12 }
 0x163   :  { %1455 = shalt.err (!%p1452_p6)
}
 0x164   :  { %s1456_s15 = scalar_lea.hbm %s1548_s3, 128 }
 0x165   :  { %p1457_p7 = scmp.ne.s32.totalorder %s1548_s3, %s1456_s15  ;;  %p1460_p8 = scmp.lt.u32.totalorder %s1456_s15, %s1548_s3 }
 0x167   :  { %p1462_p9 = pnand %p1460_p8, %p1457_p7 }
 0x169   :  { %1465 = shalt.err (!%p1462_p9)
}
 0x16a   :  { %1048 = dma.vmem_to_hbm [thread:$0]  %s1046_s11, 128, %s1548_s3, [#allocation4]  }
 0x16b   :  { %1470 = dma.done.wait [#allocation4], 128  }
 0x16c   :  { %1471 = vsyncadd [#allocation4], 4294967168 }
 0x16d   :  { %1052 = vsyncpa [#allocation3], 1 }
 0x16e   :  { %1053 = vsyncpa [#allocation6], 1 }
 0x16f   :  { %1054 = vsyncpa [#allocation4], 1 }

</bundles_post_ra>
